<compile_context>
chip_gen: v7x
topology: tpu7x:2x2x1
jax: 0.10.0
libtpu: 0.0.40
codegen_flags: <defaults>
</compile_context>

<pallas_src>
import functools

import jax
import jax.numpy as jnp
from jax import lax
from jax.experimental import pallas as pl
from jax.experimental.pallas import tpu as pltpu

# ----------------- small config (module defaults scaled down) -----------------
BATCH = 2
IMG_C, IMG_HW = 3, 16
FEATURE_DIM = 128          # stands in for resnet50's feature_dim=2048
RNN_HIDDEN = 32            # module default 256, scaled down for the toy run
CLS_HIDDEN = 512
NUM_ARTISTS, NUM_GENRES, NUM_STYLES = 5, 7, 9

LANE = 128                 # TPU lane width
SUBLANE = 8                # TPU sublane width
HEAD_SLOT = 128            # lane-dense logits slot per classifier head

VMEM_SPEC = pl.BlockSpec(memory_space=pltpu.MemorySpace.VMEM)


def _round_up(x, m):
    return (x + m - 1) // m * m


def _pick_linear_tiling():
    """Generation-aware tiling: 128-MiB-VMEM parts (v5e/v6e) take bigger tiles
    and a higher scoped-VMEM limit; v7x (64 MiB physical) keeps the
    conservative settings.  Any query failure falls back to the v7x-safe
    defaults."""
    tile_m, vmem_limit = 256, 32 * 1024 * 1024
    try:
        info = pltpu.get_tpu_info()
        vmem = getattr(info, "vmem_capacity_bytes", None)
        if vmem is not None and vmem >= 100 * 1024 * 1024:
            tile_m, vmem_limit = 512, 64 * 1024 * 1024
    except Exception:  # noqa: BLE001 - conservative fallback is always correct
        pass
    return tile_m, vmem_limit


LINEAR_TILE_M, VMEM_LIMIT = _pick_linear_tiling()


# ------------------------------- Pallas kernels --------------------------------
def _linear_kernel(x_ref, w_ref, b_ref, o_ref, *, relu):
    # bf16 operands on the MXU, f32 accumulation.  Activations may already be
    # bf16 (conv-stem output), in which case no cast is emitted at all.
    x = x_ref[...]
    if x.dtype != jnp.bfloat16:
        x = x.astype(jnp.bfloat16)
    y = jnp.dot(x, w_ref[...], preferred_element_type=jnp.float32)
    y = y + b_ref[...]
    if relu:
        y = jnp.maximum(y, 0.0)
    o_ref[...] = y.astype(o_ref.dtype)


def pallas_linear(x, w, b, *, relu=False, out_dtype=jnp.float32):
    """y = x @ w + b (optional ReLU), M-tiled with pipelined BlockSpecs.

    x: (M, K) f32 or bf16, w: (K, N) bf16 (pre-cast weights), b: (N,) f32.
    M is padded only to the sublane multiple; the grid uses cdiv so a partial
    last tile never adds up-to-TM dead rows of DMA / MXU work.
    """
    M, K = x.shape
    Kw, N = w.shape
    assert K == Kw
    Mp = _round_up(M, SUBLANE)
    if Mp != M:
        x = jnp.pad(x, ((0, Mp - M), (0, 0)))
    TM = min(LINEAR_TILE_M, Mp)
    grid_m = pl.cdiv(Mp, TM)
    cost = pl.CostEstimate(
        flops=2 * Mp * K * N, transcendentals=0,
        bytes_accessed=(Mp * K * x.dtype.itemsize + K * N * w.dtype.itemsize
                        + Mp * N * jnp.dtype(out_dtype).itemsize))
    y = pl.pallas_call(
        functools.partial(_linear_kernel, relu=relu),
        out_shape=jax.ShapeDtypeStruct((Mp, N), out_dtype),
        grid=(grid_m,),
        in_specs=[pl.BlockSpec((TM, K), lambda i: (i, 0)),   # activations: M-tiled
                  pl.BlockSpec((K, N), lambda i: (0, 0)),    # weights: resident
                  pl.BlockSpec((1, N), lambda i: (0, 0))],   # bias: resident
        out_specs=pl.BlockSpec((TM, N), lambda i: (i, 0)),
        compiler_params=pltpu.CompilerParams(
            dimension_semantics=("parallel",),
            vmem_limit_bytes=VMEM_LIMIT),
        cost_estimate=cost,
    )(x, w, b.reshape(1, N))
    return y[:M] if Mp != M else y


def _fused_heads_kernel(x_ref, w1_ref, b1_ref, w2_ref, b2_ref, o_ref,
                        *, cls_hidden, n_heads):
    """All classifier heads in one call: Linear -> ReLU -> [Dropout=id] -> Linear.

    w1 is the N-concatenation of the heads' first layers (rows laid out on the
    padded (2*Hpad) GRU-feature layout).  The second layer runs as one narrow
    dot per head into its own lane-dense 128-wide output slot -- no dead FLOPs
    from a block-diagonal weight.
    """
    x = x_ref[...]
    if x.dtype != jnp.bfloat16:
        x = x.astype(jnp.bfloat16)
    h = jnp.dot(x, w1_ref[...], preferred_element_type=jnp.float32) + b1_ref[...]
    h = jnp.maximum(h, 0.0).astype(jnp.bfloat16)
    for i in range(n_heads):                       # static, small (<=3)
        hi = h[:, i * cls_hidden:(i + 1) * cls_hidden]
        oi = jnp.dot(hi, w2_ref[i], preferred_element_type=jnp.float32) + b2_ref[i]
        o_ref[:, i * HEAD_SLOT:(i + 1) * HEAD_SLOT] = oi


def run_heads(rnn_feat_p, fused):
    """rnn_feat_p: (Bp, 2*Hpad) padded GRU features -> list of (Bp, n_cls_i) logits."""
    Bp, Dp = rnn_feat_p.shape
    n_heads = len(fused["n_cls"])
    n_out = n_heads * HEAD_SLOT
    cls_hidden = fused["w2"].shape[1]
    TM = min(256, Bp)
    cost = pl.CostEstimate(
        flops=2 * Bp * Dp * n_heads * cls_hidden
        + 2 * Bp * cls_hidden * HEAD_SLOT * n_heads,
        transcendentals=0,
        bytes_accessed=(Bp * Dp * 4 + fused["w1"].size * 2
                        + fused["w2"].size * 2 + Bp * n_out * 4))
    logits = pl.pallas_call(
        functools.partial(_fused_heads_kernel, cls_hidden=cls_hidden,
                          n_heads=n_heads),
        out_shape=jax.ShapeDtypeStruct((Bp, n_out), jnp.float32),
        grid=(pl.cdiv(Bp, TM),),
        in_specs=[pl.BlockSpec((TM, Dp), lambda i: (i, 0)),
                  pl.BlockSpec(fused["w1"].shape, lambda i: (0, 0)),
                  pl.BlockSpec(fused["b1"].shape, lambda i: (0, 0)),
                  pl.BlockSpec(fused["w2"].shape, lambda i: (0, 0, 0)),
                  pl.BlockSpec(fused["b2"].shape, lambda i: (0, 0, 0))],
        out_specs=pl.BlockSpec((TM, n_out), lambda i: (i, 0)),
        compiler_params=pltpu.CompilerParams(
            dimension_semantics=("parallel",),
            vmem_limit_bytes=VMEM_LIMIT),
        cost_estimate=cost,
    )(rnn_feat_p, fused["w1"], fused["b1"], fused["w2"], fused["b2"])
    return [logits[:, i * HEAD_SLOT:i * HEAD_SLOT + n]
            for i, n in enumerate(fused["n_cls"])]


def _bigru_mean_kernel(gx_ref, whh_ref, bhh_ref, o_ref, *, hidden_pad, seq_len):
    """Both GRU directions interleaved in one fori_loop, fused with the
    time-mean.  Gate order follows PyTorch: r, z, n; each gate owns a
    vreg-aligned Hpad(=128*k)-lane slot.

    gx_ref : (T, Bp, 2*Gd)  precomputed x_t @ W_ih^T + b_ih; lanes [0:Gd] are
             the forward direction, [Gd:2Gd] the backward direction
             (Gd = 3*Hpad, gate slots r|z|n inside each direction)
    whh_ref: (2, Hpad, Gd)  W_hh^T per direction, slotted+zero-padded, bf16
    bhh_ref: (2, 1, Gd)     b_hh per direction, f32
    o_ref  : (Bp, 2*Hpad)   [0:Hpad] = fwd time-mean, [Hpad:2Hpad] = bwd
    """
    Gs = hidden_pad                  # per-gate slot width (lane-aligned)
    Gd = 3 * Gs
    T = seq_len
    Bp = gx_ref.shape[1]

    # Hoisted out of the loop; bf16 operands keep the MXU on its native path
    # (f32xf32 would be emulated with multiple passes on the serial chain).
    whh_f = whh_ref[0]               # (Hpad, Gd) bf16
    whh_b = whh_ref[1]
    bhh_f = bhh_ref[0]               # (1, Gd) f32
    bhh_b = bhh_ref[1]

    def step(t, carry):
        h_f, h_b, s_f, s_b = carry
        gx_t = gx_ref[t]             # (Bp, 2Gd) forward reads time t
        gx_r = gx_ref[T - 1 - t]     # (Bp, 2Gd) backward reads time T-1-t
        gh_f = jnp.dot(h_f.astype(jnp.bfloat16), whh_f,
                       preferred_element_type=jnp.float32) + bhh_f
        gh_b = jnp.dot(h_b.astype(jnp.bfloat16), whh_b,
                       preferred_element_type=jnp.float32) + bhh_b
        # forward chain (all slices 128-lane aligned -> free vreg selects)
        r_f = jax.nn.sigmoid(gx_t[:, 0:Gs] + gh_f[:, 0:Gs])
        z_f = jax.nn.sigmoid(gx_t[:, Gs:2 * Gs] + gh_f[:, Gs:2 * Gs])
        n_f = jnp.tanh(gx_t[:, 2 * Gs:3 * Gs] + r_f * gh_f[:, 2 * Gs:3 * Gs])
        h_f = n_f + z_f * (h_f - n_f)          # == (1-z)*n + z*h
        # backward chain (independent -> LLO interleaves it with the forward one)
        r_b = jax.nn.sigmoid(gx_r[:, Gd:Gd + Gs] + gh_b[:, 0:Gs])
        z_b = jax.nn.sigmoid(gx_r[:, Gd + Gs:Gd + 2 * Gs] + gh_b[:, Gs:2 * Gs])
        n_b = jnp.tanh(gx_r[:, Gd + 2 * Gs:Gd + 3 * Gs]
                       + r_b * gh_b[:, 2 * Gs:3 * Gs])
        h_b = n_b + z_b * (h_b - n_b)
        return h_f, h_b, s_f + h_f, s_b + h_b

    zeros = jnp.zeros((Bp, Gs), jnp.float32)
    _, _, s_f, s_b = lax.fori_loop(0, T, step, (zeros, zeros, zeros, zeros),
                                   unroll=8)
    inv_t = 1.0 / T
    o_ref[:, 0:Gs] = s_f * inv_t
    o_ref[:, Gs:2 * Gs] = s_b * inv_t


def bigru_mean(gx, w_hh_stack, b_hh_stack, *, hidden_pad):
    """gx: (T, Bp, 2*Gd) fused fwd/bwd input gates -> (Bp, 2*Hpad) lane-dense
    time-means (== torch.mean(GRU(x)[0], dim=1) on the padded layout)."""
    T, Bp, _ = gx.shape
    kernel = functools.partial(_bigru_mean_kernel, hidden_pad=hidden_pad,
                               seq_len=T)
    return pl.pallas_call(
        kernel,
        out_shape=jax.ShapeDtypeStruct((Bp, 2 * hidden_pad), jnp.float32),
        in_specs=[VMEM_SPEC, VMEM_SPEC, VMEM_SPEC],
        out_specs=VMEM_SPEC,
        compiler_params=pltpu.CompilerParams(vmem_limit_bytes=VMEM_LIMIT),
    )(gx, w_hh_stack, b_hh_stack)


# ------------------------------ backbone stand-in ------------------------------
def conv_stem_features(x_nchw, ip):
    # TODO(synk): the full pretrained ResNet-50 backbone cannot be reproduced
    # in-script (no checkpoint load); a single 3x3/stride-2 conv + ReLU stands in,
    # honouring the same (B, feature_dim, h, w) -> sequence-of-h*w-tokens contract.
    B, C, Hh, Ww = x_nchw.shape
    h_out, w_out = Hh // 2, Ww // 2
    x_pad = jnp.pad(x_nchw, ((0, 0), (0, 0), (1, 1), (1, 1)))
    cols = [x_pad[:, :, di:di + Hh:2, dj:dj + Ww:2]          # (B, C, h, w) each
            for di in range(3) for dj in range(3)]
    patches = jnp.concatenate(cols, axis=1)                  # (B, 9C, h, w)
    # Rows ordered (spatial-t major, batch minor): the conv output lands directly
    # in the (T, B, F) layout the GRU stage consumes -- no downstream XLA
    # transpose of the big gate tensor.  Per batch element this matches
    # x.permute(0, 2, 3, 1).reshape(B, h*w, C).
    patches = patches.transpose(2, 3, 0, 1).reshape(h_out * w_out * B, 9 * C)
    patches = jnp.pad(patches, ((0, 0), (0, ip["conv_kpad"] - 9 * C)))  # K 27->32
    feats = pallas_linear(patches, ip["conv_w_flat"], ip["conv_b"],
                          relu=True, out_dtype=jnp.bfloat16)  # bf16 intermediate
    return feats.reshape(h_out * w_out, B, -1)               # (T, B, F) bf16


# ------------------------------- full forward ----------------------------------
def artwork_crnn_forward(x, ip, task="all"):
    feats = conv_stem_features(x, ip)                        # (T, B, F) bf16
    T, B, F = feats.shape
    Bp = _round_up(B, SUBLANE)
    if Bp != B:                                              # pad batch to 8 sublanes
        feats = jnp.pad(feats, ((0, 0), (0, Bp - B), (0, 0)))

    # Fused fwd+bwd GRU input projection: one matmul, output already (T, Bp, 2*Gd).
    gx = pallas_linear(feats.reshape(T * Bp, F),
                       ip["w_ih_fused"], ip["b_ih_fused"]).reshape(T, Bp, -1)

    # Interleaved bidirectional recurrence + time-mean, lane-dense (Bp, 2*Hpad).
    rnn_feat_p = bigru_mean(gx, ip["w_hh_stack"], ip["b_hh_stack"],
                            hidden_pad=ip["hidden_pad"])
    H, Hpad = ip["hidden"], ip["hidden_pad"]
    rnn_feat = jnp.concatenate([rnn_feat_p[:B, 0:H],
                                rnn_feat_p[:B, Hpad:Hpad + H]], axis=-1)

    out = {"artist": None, "genre": None, "style": None, "features": rnn_feat}
    if task == "all":
        a, g, s = run_heads(rnn_feat_p, ip["heads_all"])
        out["artist"], out["genre"], out["style"] = a[:B], g[:B], s[:B]
    elif task in ("artist", "genre", "style"):
        (logit,) = run_heads(rnn_feat_p, ip["heads_single"][task])
        out[task] = logit[:B]
    return out


# ----------------------------- deterministic params ----------------------------
def init_params(key):
    """Raw parameters in PyTorch layout (GRU weights (3H, D)/(3H, H), etc.)."""
    ks = jax.random.split(key, 24)

    def nrm(k, shape, scale=0.05):
        return (scale * jax.random.normal(k, shape)).astype(jnp.float32)

    H, D = RNN_HIDDEN, FEATURE_DIM

    def head(k0, k1, k2, k3, n_cls):
        return {"w1": nrm(k0, (2 * H, CLS_HIDDEN)), "b1": nrm(k1, (CLS_HIDDEN,)),
                "w2": nrm(k2, (CLS_HIDDEN, n_cls)), "b2": nrm(k3, (n_cls,))}

    return {
        "conv_w": nrm(ks[0], (FEATURE_DIM, IMG_C, 3, 3)),
        "conv_b": nrm(ks[1], (FEATURE_DIM,)),
        "gru": {
            "hidden": H,
            "w_ih_f": nrm(ks[2], (3 * H, D)), "w_hh_f": nrm(ks[3], (3 * H, H)),
            "b_ih_f": nrm(ks[4], (3 * H,)), "b_hh_f": nrm(ks[5], (3 * H,)),
            "w_ih_b": nrm(ks[6], (3 * H, D)), "w_hh_b": nrm(ks[7], (3 * H, H)),
            "b_ih_b": nrm(ks[8], (3 * H,)), "b_hh_b": nrm(ks[9], (3 * H,)),
        },
        "artist": head(ks[10], ks[11], ks[12], ks[13], NUM_ARTISTS),
        "genre": head(ks[14], ks[15], ks[16], ks[17], NUM_GENRES),
        "style": head(ks[18], ks[19], ks[20], ks[21], NUM_STYLES),
    }


def _fuse_heads(heads, H, Hpad):
    """First-layer weights concatenated along N (rows remapped onto the padded
    (2*Hpad) GRU-feature layout); second-layer weights stacked per head, each
    padded to its own lane-dense 128-wide logits slot."""
    hid = heads[0]["w1"].shape[1]
    n_heads = len(heads)
    w1 = jnp.zeros((2 * Hpad, n_heads * hid), jnp.float32)
    for i, h in enumerate(heads):
        w1 = w1.at[0:H, i * hid:(i + 1) * hid].set(h["w1"][0:H])
        w1 = w1.at[Hpad:Hpad + H, i * hid:(i + 1) * hid].set(h["w1"][H:2 * H])
    b1 = jnp.concatenate([h["b1"] for h in heads], axis=0)          # (n*hid,)
    w2 = jnp.zeros((n_heads, hid, HEAD_SLOT), jnp.float32)
    b2 = jnp.zeros((n_heads, 1, HEAD_SLOT), jnp.float32)
    n_cls = []
    for i, h in enumerate(heads):
        n = h["w2"].shape[1]
        n_cls.append(n)
        w2 = w2.at[i, :, 0:n].set(h["w2"])
        b2 = b2.at[i, 0, 0:n].set(h["b2"])
    return {"w1": w1.astype(jnp.bfloat16), "b1": b1.reshape(1, -1),
            "w2": w2.astype(jnp.bfloat16), "b2": b2, "n_cls": n_cls}


def prepare_params(params):
    """One-time repack of raw params into fused / gate-slotted / bf16 layouts."""
    g = params["gru"]
    H = g["hidden"]
    D = g["w_ih_f"].shape[1]
    Hpad = _round_up(H, LANE)            # per-gate slot width, lane-aligned
    Gd = 3 * Hpad                        # gate width per direction

    def slot_ih(w_ih):                   # (3H, D) -> (D, Gd), gate slots r|z|n
        wt = w_ih.T
        out = jnp.zeros((D, Gd), jnp.float32)
        for gi in range(3):
            out = out.at[:, gi * Hpad:gi * Hpad + H].set(wt[:, gi * H:(gi + 1) * H])
        return out

    def slot_hh(w_hh):                   # (3H, H) -> (Hpad, Gd)
        wt = w_hh.T
        out = jnp.zeros((Hpad, Gd), jnp.float32)
        for gi in range(3):
            out = out.at[0:H, gi * Hpad:gi * Hpad + H].set(wt[:, gi * H:(gi + 1) * H])
        return out

    def slot_b(b):                       # (3H,) -> (Gd,)
        out = jnp.zeros((Gd,), jnp.float32)
        for gi in range(3):
            out = out.at[gi * Hpad:gi * Hpad + H].set(b[gi * H:(gi + 1) * H])
        return out

    w_ih_fused = jnp.concatenate([slot_ih(g["w_ih_f"]), slot_ih(g["w_ih_b"])],
                                 axis=1)                         # (D, 2Gd)
    b_ih_fused = jnp.concatenate([slot_b(g["b_ih_f"]), slot_b(g["b_ih_b"])],
                                 axis=0)                         # (2Gd,)
    w_hh_stack = jnp.stack([slot_hh(g["w_hh_f"]), slot_hh(g["w_hh_b"])],
                           axis=0).astype(jnp.bfloat16)          # (2, Hpad, Gd)
    b_hh_stack = jnp.stack([slot_b(g["b_hh_f"]).reshape(1, Gd),
                            slot_b(g["b_hh_b"]).reshape(1, Gd)], axis=0)  # (2,1,Gd)

    C = params["conv_w"].shape[1]
    kc = 9 * C
    kp = _round_up(kc, 32)               # im2col K: 27 -> 32 (full sublanes)
    w_flat = params["conv_w"].transpose(2, 3, 1, 0).reshape(kc, -1)
    w_flat = jnp.pad(w_flat, ((0, kp - kc), (0, 0)))

    return {
        "conv_w_flat": w_flat.astype(jnp.bfloat16),
        "conv_b": params["conv_b"],
        "conv_kpad": kp,
        "hidden": H,
        "hidden_pad": Hpad,
        "w_ih_fused": w_ih_fused.astype(jnp.bfloat16),
        "b_ih_fused": b_ih_fused,
        "w_hh_stack": w_hh_stack,        # bf16 MXU operands; gates stay f32
        "b_hh_stack": b_hh_stack,
        "heads_all": _fuse_heads([params["artist"], params["genre"],
                                  params["style"]], H, Hpad),
        "heads_single": {k: _fuse_heads([params[k]], H, Hpad)
                         for k in ("artist", "genre", "style")},
    }


if __name__ == "__main__":
    key = jax.random.PRNGKey(0)
    pkey, xkey = jax.random.split(key)
    raw_params = init_params(pkey)
    iparams = prepare_params(raw_params)
    x = jax.random.normal(xkey, (BATCH, IMG_C, IMG_HW, IMG_HW), dtype=jnp.float32)

    out = artwork_crnn_forward(x, iparams, task="all")
    out = jax.block_until_ready(out)

    assert out["artist"].shape == (BATCH, NUM_ARTISTS)
    assert out["genre"].shape == (BATCH, NUM_GENRES)
    assert out["style"].shape == (BATCH, NUM_STYLES)
    assert out["features"].shape == (BATCH, 2 * RNN_HIDDEN)
    assert all(jnp.isfinite(v).all() for v in out.values())
    print("KERNEL_OK")
</pallas_src>

<mosaic_0001>
module attributes {stable_mosaic.version = 11 : i64} {
  func.func @_linear_kernel(%arg0: i32, %arg1: memref<128x32xf32, #tpu.memory_space<vmem>>, %arg2: memref<32x128xbf16, #tpu.memory_space<vmem>>, %arg3: memref<1x128xf32, #tpu.memory_space<vmem>>, %arg4: memref<128x128xbf16, #tpu.memory_space<vmem>>) attributes {dimension_semantics = [#tpu.dimension_semantics<parallel>], iteration_bounds = array<i64: 1>, scalar_prefetch = 0 : i64, scratch_operands = 0 : i64, tpu.core_type = #tpu.core_type<tc>, window_params = [{transform_indices = @transform_0, window_bounds = array<i64: 128, 32>}, {pipeline_mode = #tpu.pipeline_mode<synchronous>, transform_indices = @transform_1, window_bounds = array<i64: 32, 128>}, {pipeline_mode = #tpu.pipeline_mode<synchronous>, transform_indices = @transform_2, window_bounds = array<i64: 1, 128>}, {transform_indices = @transform_3, window_bounds = array<i64: 128, 128>}]} {
    %c0 = arith.constant 0 : index
    %c0_0 = arith.constant 0 : index
    %0 = vector.load %arg1[%c0, %c0_0] : memref<128x32xf32, #tpu.memory_space<vmem>>, vector<128x32xf32>
    %1 = arith.truncf %0 : vector<128x32xf32> to vector<128x32xbf16>
    %c0_1 = arith.constant 0 : index
    %c0_2 = arith.constant 0 : index
    %2 = vector.load %arg2[%c0_1, %c0_2] : memref<32x128xbf16, #tpu.memory_space<vmem>>, vector<32x128xbf16>
    %cst = arith.constant dense<0.000000e+00> : vector<128x128xf32>
    %3 = tpu.matmul %1, %2, %cst {dimension_numbers = #tpu.dot_dimension_numbers<[1], [0], [0], [1], [0, 0, 1, 1], [], []>} : vector<128x32xbf16>, vector<32x128xbf16>, vector<128x128xf32> -> vector<128x128xf32>
    %c0_3 = arith.constant 0 : index
    %c0_4 = arith.constant 0 : index
    %4 = vector.load %arg3[%c0_3, %c0_4] : memref<1x128xf32, #tpu.memory_space<vmem>>, vector<1x128xf32>
    %5 = vector.broadcast %4 : vector<1x128xf32> to vector<128x128xf32>
    %6 = arith.addf %3, %5 : vector<128x128xf32>
    %cst_5 = arith.constant 0.000000e+00 : f32
    %7 = vector.broadcast %cst_5 : f32 to vector<128x128xf32>
    %8 = arith.maximumf %6, %7 : vector<128x128xf32>
    %9 = arith.truncf %8 : vector<128x128xf32> to vector<128x128xbf16>
    %c0_6 = arith.constant 0 : index
    %c0_7 = arith.constant 0 : index
    %10 = vector.load %arg4[%c0_6, %c0_7] : memref<128x128xbf16, #tpu.memory_space<vmem>>, vector<128x128xbf16>
    tpu.vector_store %arg4[%c0_6, %c0_7], %9 {strides = array<i32>} : memref<128x128xbf16, #tpu.memory_space<vmem>>, vector<128x128xbf16>,
    return
  }
  func.func @transform_0(%arg0: i32) -> (i32, i32) {
    %c0_i32 = arith.constant 0 : i32
    %c0_i32_0 = arith.constant 0 : i32
    return %arg0, %c0_i32 : i32, i32
  }
  func.func @transform_1(%arg0: i32) -> (i32, i32) {
    %c0_i32 = arith.constant 0 : i32
    %c0_i32_0 = arith.constant 0 : i32
    %c0_i32_1 = arith.constant 0 : i32
    return %c0_i32, %c0_i32_0 : i32, i32
  }
  func.func @transform_2(%arg0: i32) -> (i32, i32) {
    %c0_i32 = arith.constant 0 : i32
    %c0_i32_0 = arith.constant 0 : i32
    %c0_i32_1 = arith.constant 0 : i32
    return %c0_i32, %c0_i32_0 : i32, i32
  }
  func.func @transform_3(%arg0: i32) -> (i32, i32) {
    %c0_i32 = arith.constant 0 : i32
    %c0_i32_0 = arith.constant 0 : i32
    return %arg0, %c0_i32 : i32, i32
  }
}

</mosaic_0001>

<bundles_post_ra>
// kernel: tpu_custom_call.1
= control target key start
LH: loop header
LB: loop body
LE: loop exit
PB: predicated region body
PF: predicated region fallthrough
CT: control target
= control target key end

     0   :  { %vm63_vm0 = vcmask 261120   ;;  %s550_s0 = inlined_call_operand.vmem [shape: f32[128,32], index: 0, kind: input, shape index: {}]   ;;  %s551_s1 = inlined_call_operand.vmem [shape: bf16[32,128], index: 1, kind: input, shape index: {}]   ;;  %s552_s2 = inlined_call_operand.vmem [shape: f32[1,128], index: 2, kind: input, shape index: {}]   ;;  %s553_s3 = inlined_call_operand.hbm [shape: bf16[128,128], index: 3, kind: output, shape index: {}]  }
   0x1   :  { %v424_v0 = vld [vmem:[%s551_s1] sm:$0xff]   ;;  %v425_v1 = vld [vmem:[%s551_s1 + $0x8] sm:$0xff]   ;;  %v18_v7 = vld [vmem:[%s550_s0 + $0x10] sm:$0xff] }
   0x2   :  { %397 = vmatprep.subr.bf16.mxu0 %v424_v0  ;;  %417 = vmatprep.subr.bf16.mxu1 %v424_v0  ;;  %v16_v2 = vld [vmem:[%s550_s0] sm:$0xff]  ;;  %v17_v3 = vld [vmem:[%s550_s0 + $0x8] sm:$0xff]  ;;  %v19_v8 = vld [vmem:[%s550_s0 + $0x18] sm:$0xff] }
   0x3   :  { %v24_v4 = vld [vmem:[%s550_s0 + $0x40] sm:$0xff]  ;;  %398 = vmatpush3.bf16.msra.mxu0 %v424_v0  ;;  %419 = vmatpush3.bf16.msra.mxu1 %v424_v0  ;;  %v32_v5 = vpack.c.bf16 %v17_v3, %v16_v2  ;;  %v25_v6 = vld [vmem:[%s550_s0 + $0x48] sm:$0xff]  ;;  %v26_v10 = vld [vmem:[%s550_s0 + $0x50] sm:$0xff]  ;;  %v33_v16 = vpack.c.bf16 %v19_v8, %v18_v7 }
   0x4   :  { %399 = vmatprep.subr.bf16.mxu0 %v425_v1  ;;  %418 = vmatprep.subr.bf16.mxu1 %v425_v1  ;;  %v36_v9 = vpack.c.bf16 %v25_v6, %v24_v4  ;;  %v27_v11 = vld [vmem:[%s550_s0 + $0x58] sm:$0xff]  ;;  %v20_v12 = vld [vmem:[%s550_s0 + $0x20] sm:$0xff]  ;;  %v21_v13 = vld [vmem:[%s550_s0 + $0x28] sm:$0xff] }
   0x5   :  { %401 = vmatprep.mubr.msk.bf16.mxu0 %vm63_vm0, %v32_v5  ;;  %v28_v14 = vld [vmem:[%s550_s0 + $0x60] sm:$0xff]  ;;  %v29_v15 = vld [vmem:[%s550_s0 + $0x68] sm:$0xff]  ;;  %v37_v17 = vpack.c.bf16 %v27_v11, %v26_v10  ;;  %v34_v18 = vpack.c.bf16 %v21_v13, %v20_v12 }
   0x6   :  { %409 = vmatprep.mubr.msk.bf16.mxu1 %vm63_vm0, %v36_v9  ;;  %v38_v19 = vpack.c.bf16 %v29_v15, %v28_v14 }
   0x7   :  { %400 = vmatpush3.bf16.msra.mxu0 %v425_v1  ;;  %420 = vmatpush3.bf16.msra.mxu1 %v425_v1 }
   0x8   :  { %8 = vsyncpa [#allocation3], 0  ;;  %v22_v20 = vld [vmem:[%s550_s0 + $0x30] sm:$0xff]  ;;  %v23_v21 = vld [vmem:[%s550_s0 + $0x38] sm:$0xff] }
   0x9   :  { %v30_v22 = vld [vmem:[%s550_s0 + $0x70] sm:$0xff]  ;;  %v31_v23 = vld [vmem:[%s550_s0 + $0x78] sm:$0xff]  ;;  %v35_v24 = vpack.c.bf16 %v23_v21, %v22_v20  ;;  %v297_v26 = vld [vmem:[%s552_s2] ss:$0 sm:$0xff]  ;;  %s450_s0 = smov [#allocation2]  }
   0xa   :  { %402 = vmatmul.mubr.msk.bf16.vlgmr.msra.gmra.mrb[0].mxu0 %vm63_vm0, %v33_v16  ;;  %410 = vmatmul.mubr.msk.bf16.vlgmr.msra.gmra.mrb[0].mxu1 %vm63_vm0, %v37_v17  ;;  %v39_v25 = vpack.c.bf16 %v31_v23, %v30_v22  ;;  %s286_s2 = sshll.u32 %s450_s0, 4  ;;  %s287_s2 = int_to_ptr.vmem [resolvable:$true] %s286_s2 }
   0xb   :  { %405 = vmatprep.mubr.msk.bf16.mxu0 %vm63_vm0, %v34_v18  ;;  %413 = vmatprep.mubr.msk.bf16.mxu1 %vm63_vm0, %v38_v19  ;;  %s426_s22 = scalar_lea.vmem %s287_s2, 1024  ;;  %p431_p1 = scmp.lt.s32.totalorder %s287_s2, %s287_s2 }
   0xc   :  { %p427_p0 = scmp.ne.s32.totalorder %s287_s2, %s426_s22  ;;  %p432_p2 = scmp.lt.s32.totalorder %s426_s22, %s426_s22 }
   0xe   :  { %p433_p3 = por %p432_p2, %p431_p1 }
  0x10   :  { %p434_p4 = pnand %p433_p3, %p427_p0 }
  0x12   :  { %406 = vmatmul.mubr.msk.bf16.gmra.mrb[4].mxu0 %vm63_vm0, %v35_v24  ;;  %414 = vmatmul.mubr.msk.bf16.gmra.mrb[4].mxu1 %vm63_vm0, %v39_v25 }
  0xdd   :  { %v403_v27 = vpop.f32.mrb[0].mxu0  ;;  %v411_v28 = vpop.f32.mrb[0].mxu1 }
  0xde   :  { %v131_v29 = vadd.f32 %v403_v27, %v297_v26  ;;  %v163_v30 = vadd.f32 %v411_v28, %v297_v26  ;;  %v122_v31 = vpop.f32.mrb[1].mxu0  ;;  %v154_v32 = vpop.f32.mrb[1].mxu1 }
  0xdf   :  { %v123_v33 = vadd.f32 %v297_v26, %v122_v31  ;;  %v155_v34 = vadd.f32 %v297_v26, %v154_v32  ;;  %v404_v35 = vpop.f32.mrb[2].mxu0  ;;  %v412_v36 = vpop.f32.mrb[2].mxu1 }
  0xe0   :  { %v134_v37 = vadd.f32 %v404_v35, %v297_v26  ;;  %v166_v38 = vadd.f32 %v412_v36, %v297_v26  ;;  %v125_v39 = vpop.f32.mrb[3].mxu0  ;;  %v157_v40 = vpop.f32.mrb[3].mxu1  ;;  %v187_v43 = vmax.f32 %v131_v29, 0.0  ;;  %v195_v44 = vmax.f32 %v163_v30, 0.0 }
  0xe1   :  { %v126_v41 = vadd.f32 %v297_v26, %v125_v39  ;;  %v158_v42 = vadd.f32 %v297_v26, %v157_v40  ;;  %v185_v47 = vmax.f32 %v123_v33, 0.0  ;;  %v193_v48 = vmax.f32 %v155_v34, 0.0 }
  0xe2   :  { %v188_v45 = vmax.f32 %v134_v37, 0.0  ;;  %v196_v46 = vmax.f32 %v166_v38, 0.0 }
  0xe3   :  { %v186_v49 = vmax.f32 %v126_v41, 0.0  ;;  %v194_v50 = vmax.f32 %v158_v42, 0.0 }
  0xe4   :  { %v348_v51 = vpack.c.bf16 %v188_v45, %v187_v43  ;;  %v368_v52 = vpack.c.bf16 %v196_v46, %v195_v44 }
  0xe5   :  { %v343_v53 = vpack.c.bf16 %v186_v49, %v185_v47  ;;  %v363_v54 = vpack.c.bf16 %v194_v50, %v193_v48  ;;  %v407_v55 = vpop.f32.mrb[4].mxu0  ;;  %v415_v56 = vpop.f32.mrb[4].mxu1 }
  0xe6   :  { %380 = vst [vmem:[#allocation2 + $0x8] sm:$0xff] %v348_v51   ;;  %384 = vst [vmem:[#allocation2 + $0x28] sm:$0xff] %v368_v52   ;;  %v147_v57 = vadd.f32 %v407_v55, %v297_v26  ;;  %v179_v58 = vadd.f32 %v415_v56, %v297_v26  ;;  %v138_v59 = vpop.f32.mrb[5].mxu0  ;;  %v170_v60 = vpop.f32.mrb[5].mxu1 }
  0xe7   :  { %344 = vst [vmem:[#allocation2] sm:$0xff] %v343_v53   ;;  %383 = vst [vmem:[#allocation2 + $0x20] sm:$0xff] %v363_v54   ;;  %v139_v61 = vadd.f32 %v297_v26, %v138_v59  ;;  %v171_v62 = vadd.f32 %v297_v26, %v170_v60  ;;  %v408_v63 = vpop.f32.mrb[6].mxu0  ;;  %v416_v0 = vpop.f32.mrb[6].mxu1 }
  0xe8   :  { %v150_v1 = vadd.f32 %v408_v63, %v297_v26  ;;  %v182_v2 = vadd.f32 %v416_v0, %v297_v26  ;;  %v141_v3 = vpop.f32.mrb[7].mxu0  ;;  %v173_v4 = vpop.f32.mrb[7].mxu1  ;;  %v191_v7 = vmax.f32 %v147_v57, 0.0  ;;  %v199_v8 = vmax.f32 %v179_v58, 0.0 }
  0xe9   :  { %v142_v5 = vadd.f32 %v297_v26, %v141_v3  ;;  %v174_v6 = vadd.f32 %v297_v26, %v173_v4  ;;  %v189_v11 = vmax.f32 %v139_v61, 0.0  ;;  %v197_v12 = vmax.f32 %v171_v62, 0.0 }
  0xea   :  { %v192_v9 = vmax.f32 %v150_v1, 0.0  ;;  %v200_v10 = vmax.f32 %v182_v2, 0.0 }
  0xeb   :  { %v190_v13 = vmax.f32 %v142_v5, 0.0  ;;  %v198_v14 = vmax.f32 %v174_v6, 0.0 }
  0xec   :  { %v358_v15 = vpack.c.bf16 %v192_v9, %v191_v7  ;;  %v378_v16 = vpack.c.bf16 %v200_v10, %v199_v8 }
  0xed   :  { %v353_v17 = vpack.c.bf16 %v190_v13, %v189_v11  ;;  %v373_v18 = vpack.c.bf16 %v198_v14, %v197_v12 }
  0xee   :  { %382 = vst [vmem:[#allocation2 + $0x18] sm:$0xff] %v358_v15   ;;  %386 = vst [vmem:[#allocation2 + $0x38] sm:$0xff] %v378_v16  }
  0xef   :  { %381 = vst [vmem:[#allocation2 + $0x10] sm:$0xff] %v353_v17   ;;  %385 = vst [vmem:[#allocation2 + $0x30] sm:$0xff] %v373_v18  }
  0xf0   :  { %437 = shalt.err (!%p434_p4)
}
  0xf1   :  { %s438_s24 = scalar_lea.hbm %s553_s3, 1024 }
  0xf2   :  { %p439_p5 = scmp.ne.s32.totalorder %s553_s3, %s438_s24  ;;  %p442_p6 = scmp.lt.u32.totalorder %s438_s24, %s553_s3 }
  0xf4   :  { %p444_p7 = pnand %p442_p6, %p439_p5 }
  0xf6   :  { %447 = shalt.err (!%p444_p7)
}
  0xf7   :  { %s451_s29 = smov 64   ;;  %s452_s30 = smov 4  }
  0xf8   :  { %292 = dma.vmem_to_hbm [thread:$0]  %s287_s2, 1024, %s553_s3, [#allocation3], %s451_s29, %s451_s29, %s452_s30  }
  0xf9   :  { %448 = dma.done.wait [#allocation3], 1024  }
  0xfa   :  { %449 = vsyncadd [#allocation3], 4294966272 }
  0xfb   :  { %296 = vsyncpa [#allocation3], 1 }

</bundles_post_ra>
